<compile_context>
chip_gen: v7x
topology: tpu7x:2x2x1
jax: 0.10.0
libtpu: 0.0.40
codegen_flags: <defaults>
</compile_context>

<pallas_src>
import jax
import jax.numpy as jnp
from jax.experimental import pallas as pl
from jax.experimental.pallas import tpu as pltpu

_OUT_PAD = 128  # lane-dense final layer; only column 0 is the real output


def _round_up(n, m):
    return ((n + m - 1) // m) * m


def _cdiv(a, b):
    return (a + b - 1) // b


def _make_kernel(has_extra):
    """Fused 4-layer MLP kernel; layer 1 is split by input source if x_extra."""

    def kernel(*refs):
        if has_extra:
            (x_ref, xe_ref, w1a_ref, w1b_ref, b1_ref,
             w2_ref, b2_ref, w3_ref, b3_ref, w4_ref, b4_ref, o_ref) = refs
            # Layer 1 as (x | x_extra) @ (w1[:z] | w1[z:]) summed in f32;
            # bf16 cast + K-padding happen in-kernel (no wrapper materialization).
            h = jnp.dot(x_ref[...].astype(jnp.bfloat16), w1a_ref[...],
                        preferred_element_type=jnp.float32)
            h = h + jnp.dot(xe_ref[...].astype(jnp.bfloat16), w1b_ref[...],
                            preferred_element_type=jnp.float32)
        else:
            (x_ref, w1a_ref, b1_ref,
             w2_ref, b2_ref, w3_ref, b3_ref, w4_ref, b4_ref, o_ref) = refs
            h = jnp.dot(x_ref[...].astype(jnp.bfloat16), w1a_ref[...],
                        preferred_element_type=jnp.float32)
        h = jnp.maximum(h + b1_ref[...], 0.0)
        # Layer 2: (TB, 512) @ (512, 256)
        h = jnp.dot(h.astype(jnp.bfloat16), w2_ref[...],
                    preferred_element_type=jnp.float32)
        h = jnp.maximum(h + b2_ref[...], 0.0)
        # Layer 3: (TB, 256) @ (256, 256)
        h = jnp.dot(h.astype(jnp.bfloat16), w3_ref[...],
                    preferred_element_type=jnp.float32)
        h = jnp.maximum(h + b3_ref[...], 0.0)
        # Layer 4: (TB, 256) @ (256, 128-padded); padded cols are zero.
        y = jnp.dot(h.astype(jnp.bfloat16), w4_ref[...],
                    preferred_element_type=jnp.float32)
        o_ref[...] = jnp.tanh(y + b4_ref[...]).astype(o_ref.dtype)

    return kernel


def init_latent_ctrl_params(key, z_dim, extra_dim):
    """weights_init semantics: W ~ N(0, 0.02), b = 0; W stored as (in, out)."""
    in_dim = z_dim + extra_dim
    dims = [(in_dim, 512), (512, 256), (256, 256), (256, 1)]
    params = {}
    for i, (din, dout) in enumerate(dims, start=1):
        key, sub = jax.random.split(key)
        params[f"w{i}"] = 0.02 * jax.random.normal(sub, (din, dout), jnp.float32)
        params[f"b{i}"] = jnp.zeros((1, dout), jnp.float32)
    return params


def _vmem_limit_bytes():
    # ~3/4 of physical VMEM, capped at 64 MiB: ~48 MiB on v7x (64 MiB VMEM),
    # 64 MiB on v5e/v6e (128 MiB VMEM).
    try:
        cap = pltpu.get_tpu_info().vmem_capacity_bytes
    except Exception:
        cap = 64 * 1024 * 1024
    return int(min(64 * 1024 * 1024, cap * 3 // 4))


def _pick_batch_tile(batch, batch_tile):
    if batch <= 32:
        return _round_up(batch, 8)               # tiny batch: single block
    if batch <= 2 * batch_tile:
        return _round_up(_cdiv(batch, 2), 16)    # >= 2 grid steps: both v7x TCs busy
    return batch_tile                            # large batch: big tiles amortize step cost


def latent_ctrl_forward(params, x, x_extra=None, *, batch_tile=2048):
    """Pallas-fused forward of LatentCtrl.FC.

    x:       (B, z_dim) float32
    x_extra: (B, extra_dim) float32 or None
    returns: (B, 1) float32
    """
    x = x.astype(jnp.float32)
    B, z_dim = x.shape
    has_extra = x_extra is not None
    if has_extra:
        x_extra = x_extra.astype(jnp.float32)
        extra_dim = x_extra.shape[1]
    else:
        extra_dim = 0
    in_dim = z_dim + extra_dim

    TB = _pick_batch_tile(B, batch_tile)
    grid = (_cdiv(B, TB),)

    # Weight prep (tiny, constant-folded under jit): split w1 by input source,
    # pad the 1-wide final layer to 128 zero lanes, bf16 MXU operands,
    # f32 biases.
    w1 = params["w1"]
    w1a = w1[:z_dim].astype(jnp.bfloat16)
    w1b = w1[z_dim:].astype(jnp.bfloat16)
    w4p = jnp.zeros((256, _OUT_PAD), jnp.float32).at[:, :1].set(params["w4"])
    b4p = jnp.zeros((1, _OUT_PAD), jnp.float32).at[:, :1].set(params["b4"])

    row_spec = lambda i: (i, 0)     # batch-tiled, pipelined
    const = lambda i: (0, 0)        # weights/biases: VMEM-resident across grid

    in_specs = [pl.BlockSpec((TB, z_dim), row_spec)]
    args = [x]
    if has_extra:
        in_specs.append(pl.BlockSpec((TB, extra_dim), row_spec))
        args.append(x_extra)
    in_specs.append(pl.BlockSpec((z_dim, 512), const))
    args.append(w1a)
    if has_extra:
        in_specs.append(pl.BlockSpec((extra_dim, 512), const))
        args.append(w1b)
    in_specs += [
        pl.BlockSpec((1, 512), const),
        pl.BlockSpec((512, 256), const),
        pl.BlockSpec((1, 256), const),
        pl.BlockSpec((256, 256), const),
        pl.BlockSpec((1, 256), const),
        pl.BlockSpec((256, _OUT_PAD), const),
        pl.BlockSpec((1, _OUT_PAD), const),
    ]
    args += [
        params["b1"],
        params["w2"].astype(jnp.bfloat16), params["b2"],
        params["w3"].astype(jnp.bfloat16), params["b3"],
        w4p.astype(jnp.bfloat16), b4p,
    ]

    rows = grid[0] * TB
    flops = 2 * rows * (in_dim * 512 + 512 * 256 + 256 * 256 + 256 * _OUT_PAD)
    weight_bytes = (in_dim * 512 + 512 * 256 + 256 * 256 + 256 * _OUT_PAD) * 2 \
        + (512 + 256 + 256 + _OUT_PAD) * 4
    bytes_accessed = B * in_dim * 4 + weight_bytes + B * _OUT_PAD * 2

    out = pl.pallas_call(
        _make_kernel(has_extra),
        out_shape=jax.ShapeDtypeStruct((B, _OUT_PAD), jnp.bfloat16),
        grid=grid,
        in_specs=in_specs,
        out_specs=pl.BlockSpec((TB, _OUT_PAD), row_spec),
        compiler_params=pltpu.CompilerParams(
            dimension_semantics=("parallel",),
            vmem_limit_bytes=_vmem_limit_bytes(),
        ),
        cost_estimate=pl.CostEstimate(
            flops=int(flops),
            transcendentals=int(rows * _OUT_PAD),
            bytes_accessed=int(bytes_accessed),
        ),
    )(*args)

    # Only column 0 is real; cast back to f32 to match the PyTorch module.
    return out[:, :1].astype(jnp.float32)


def _reference_forward(params, x, x_extra=None):
    """Plain-JAX f32 reference matching the PyTorch module."""
    if x_extra is not None:
        x = jnp.concatenate([x, x_extra], axis=1)
    h = jnp.maximum(x @ params["w1"] + params["b1"], 0.0)
    h = jnp.maximum(h @ params["w2"] + params["b2"], 0.0)
    h = jnp.maximum(h @ params["w3"] + params["b3"], 0.0)
    return jnp.tanh(h @ params["w4"] + params["b4"])


if __name__ == "__main__":
    z_dim, extra_dim, batch = 32, 8, 8

    key = jax.random.PRNGKey(0)
    k_params, k_x, k_extra = jax.random.split(key, 3)

    params = init_latent_ctrl_params(k_params, z_dim, extra_dim)
    x = jax.random.normal(k_x, (batch, z_dim), jnp.float32)
    x_extra = jax.random.normal(k_extra, (batch, extra_dim), jnp.float32)

    y = latent_ctrl_forward(params, x, x_extra)
    jax.block_until_ready(y)

    y_ref = _reference_forward(params, x, x_extra)
    assert y.shape == (batch, 1)
    # bf16 MXU operands / bf16 output (f32 accumulation) -> widened tolerance.
    max_diff = jnp.max(jnp.abs(y - y_ref))
    assert jnp.allclose(y, y_ref, atol=2e-2, rtol=2e-2), f"max diff {max_diff}"

    print("KERNEL_OK")
</pallas_src>

<mosaic_0001>
module attributes {stable_mosaic.version = 11 : i64} {
  func.func @kernel(%arg0: i32, %arg1: memref<8x32xf32, #tpu.memory_space<vmem>>, %arg2: memref<8x8xf32, #tpu.memory_space<vmem>>, %arg3: memref<32x512xbf16, #tpu.memory_space<vmem>>, %arg4: memref<8x512xbf16, #tpu.memory_space<vmem>>, %arg5: memref<1x512xf32, #tpu.memory_space<vmem>>, %arg6: memref<512x256xbf16, #tpu.memory_space<vmem>>, %arg7: memref<1x256xf32, #tpu.memory_space<vmem>>, %arg8: memref<256x256xbf16, #tpu.memory_space<vmem>>, %arg9: memref<1x256xf32, #tpu.memory_space<vmem>>, %arg10: memref<256x128xbf16, #tpu.memory_space<vmem>>, %arg11: memref<1x128xf32, #tpu.memory_space<vmem>>, %arg12: memref<8x128xbf16, #tpu.memory_space<vmem>>) attributes {dimension_semantics = [#tpu.dimension_semantics<parallel>], iteration_bounds = array<i64: 1>, scalar_prefetch = 0 : i64, scratch_operands = 0 : i64, tpu.core_type = #tpu.core_type<tc>, window_params = [{transform_indices = @transform_0, window_bounds = array<i64: 8, 32>}, {transform_indices = @transform_1, window_bounds = array<i64: 8, 8>}, {pipeline_mode = #tpu.pipeline_mode<synchronous>, transform_indices = @transform_2, window_bounds = array<i64: 32, 512>}, {pipeline_mode = #tpu.pipeline_mode<synchronous>, transform_indices = @transform_3, window_bounds = array<i64: 8, 512>}, {pipeline_mode = #tpu.pipeline_mode<synchronous>, transform_indices = @transform_4, window_bounds = array<i64: 1, 512>}, {pipeline_mode = #tpu.pipeline_mode<synchronous>, transform_indices = @transform_5, window_bounds = array<i64: 512, 256>}, {pipeline_mode = #tpu.pipeline_mode<synchronous>, transform_indices = @transform_6, window_bounds = array<i64: 1, 256>}, {pipeline_mode = #tpu.pipeline_mode<synchronous>, transform_indices = @transform_7, window_bounds = array<i64: 256, 256>}, {pipeline_mode = #tpu.pipeline_mode<synchronous>, transform_indices = @transform_8, window_bounds = array<i64: 1, 256>}, {pipeline_mode = #tpu.pipeline_mode<synchronous>, transform_indices = @transform_9, window_bounds = array<i64: 256, 128>}, {pipeline_mode = #tpu.pipeline_mode<synchronous>, transform_indices = @transform_10, window_bounds = array<i64: 1, 128>}, {transform_indices = @transform_11, window_bounds = array<i64: 8, 128>}]} {
    %c0 = arith.constant 0 : index
    %c0_0 = arith.constant 0 : index
    %0 = vector.load %arg1[%c0, %c0_0] : memref<8x32xf32, #tpu.memory_space<vmem>>, vector<8x32xf32>
    %1 = arith.truncf %0 : vector<8x32xf32> to vector<8x32xbf16>
    %c0_1 = arith.constant 0 : index
    %c0_2 = arith.constant 0 : index
    %2 = vector.load %arg3[%c0_1, %c0_2] : memref<32x512xbf16, #tpu.memory_space<vmem>>, vector<32x512xbf16>
    %cst = arith.constant dense<0.000000e+00> : vector<8x512xf32>
    %3 = tpu.matmul %1, %2, %cst {dimension_numbers = #tpu.dot_dimension_numbers<[1], [0], [0], [1], [0, 0, 1, 1], [], []>} : vector<8x32xbf16>, vector<32x512xbf16>, vector<8x512xf32> -> vector<8x512xf32>
    %c0_3 = arith.constant 0 : index
    %c0_4 = arith.constant 0 : index
    %4 = vector.load %arg2[%c0_3, %c0_4] : memref<8x8xf32, #tpu.memory_space<vmem>>, vector<8x8xf32>
    %5 = arith.truncf %4 : vector<8x8xf32> to vector<8x8xbf16>
    %c0_5 = arith.constant 0 : index
    %c0_6 = arith.constant 0 : index
    %6 = vector.load %arg4[%c0_5, %c0_6] : memref<8x512xbf16, #tpu.memory_space<vmem>>, vector<8x512xbf16>
    %cst_7 = arith.constant dense<0.000000e+00> : vector<8x512xf32>
    %7 = tpu.matmul %5, %6, %cst_7 {dimension_numbers = #tpu.dot_dimension_numbers<[1], [0], [0], [1], [0, 0, 1, 1], [], []>} : vector<8x8xbf16>, vector<8x512xbf16>, vector<8x512xf32> -> vector<8x512xf32>
    %8 = arith.addf %3, %7 : vector<8x512xf32>
    %c0_8 = arith.constant 0 : index
    %c0_9 = arith.constant 0 : index
    %9 = vector.load %arg5[%c0_8, %c0_9] : memref<1x512xf32, #tpu.memory_space<vmem>>, vector<1x512xf32>
    %10 = vector.broadcast %9 : vector<1x512xf32> to vector<8x512xf32>
    %11 = arith.addf %8, %10 : vector<8x512xf32>
    %cst_10 = arith.constant 0.000000e+00 : f32
    %12 = vector.broadcast %cst_10 : f32 to vector<8x512xf32>
    %13 = arith.maximumf %11, %12 : vector<8x512xf32>
    %14 = arith.truncf %13 : vector<8x512xf32> to vector<8x512xbf16>
    %c0_11 = arith.constant 0 : index
    %c0_12 = arith.constant 0 : index
    %15 = vector.load %arg6[%c0_11, %c0_12] : memref<512x256xbf16, #tpu.memory_space<vmem>>, vector<512x256xbf16>
    %cst_13 = arith.constant dense<0.000000e+00> : vector<8x256xf32>
    %16 = tpu.matmul %14, %15, %cst_13 {dimension_numbers = #tpu.dot_dimension_numbers<[1], [0], [0], [1], [0, 0, 1, 1], [], []>} : vector<8x512xbf16>, vector<512x256xbf16>, vector<8x256xf32> -> vector<8x256xf32>
    %c0_14 = arith.constant 0 : index
    %c0_15 = arith.constant 0 : index
    %17 = vector.load %arg7[%c0_14, %c0_15] : memref<1x256xf32, #tpu.memory_space<vmem>>, vector<1x256xf32>
    %18 = vector.broadcast %17 : vector<1x256xf32> to vector<8x256xf32>
    %19 = arith.addf %16, %18 : vector<8x256xf32>
    %cst_16 = arith.constant 0.000000e+00 : f32
    %20 = vector.broadcast %cst_16 : f32 to vector<8x256xf32>
    %21 = arith.maximumf %19, %20 : vector<8x256xf32>
    %22 = arith.truncf %21 : vector<8x256xf32> to vector<8x256xbf16>
    %c0_17 = arith.constant 0 : index
    %c0_18 = arith.constant 0 : index
    %23 = vector.load %arg8[%c0_17, %c0_18] : memref<256x256xbf16, #tpu.memory_space<vmem>>, vector<256x256xbf16>
    %cst_19 = arith.constant dense<0.000000e+00> : vector<8x256xf32>
    %24 = tpu.matmul %22, %23, %cst_19 {dimension_numbers = #tpu.dot_dimension_numbers<[1], [0], [0], [1], [0, 0, 1, 1], [], []>} : vector<8x256xbf16>, vector<256x256xbf16>, vector<8x256xf32> -> vector<8x256xf32>
    %c0_20 = arith.constant 0 : index
    %c0_21 = arith.constant 0 : index
    %25 = vector.load %arg9[%c0_20, %c0_21] : memref<1x256xf32, #tpu.memory_space<vmem>>, vector<1x256xf32>
    %26 = vector.broadcast %25 : vector<1x256xf32> to vector<8x256xf32>
    %27 = arith.addf %24, %26 : vector<8x256xf32>
    %cst_22 = arith.constant 0.000000e+00 : f32
    %28 = vector.broadcast %cst_22 : f32 to vector<8x256xf32>
    %29 = arith.maximumf %27, %28 : vector<8x256xf32>
    %30 = arith.truncf %29 : vector<8x256xf32> to vector<8x256xbf16>
    %c0_23 = arith.constant 0 : index
    %c0_24 = arith.constant 0 : index
    %31 = vector.load %arg10[%c0_23, %c0_24] : memref<256x128xbf16, #tpu.memory_space<vmem>>, vector<256x128xbf16>
    %cst_25 = arith.constant dense<0.000000e+00> : vector<8x128xf32>
    %32 = tpu.matmul %30, %31, %cst_25 {dimension_numbers = #tpu.dot_dimension_numbers<[1], [0], [0], [1], [0, 0, 1, 1], [], []>} : vector<8x256xbf16>, vector<256x128xbf16>, vector<8x128xf32> -> vector<8x128xf32>
    %c0_26 = arith.constant 0 : index
    %c0_27 = arith.constant 0 : index
    %33 = vector.load %arg11[%c0_26, %c0_27] : memref<1x128xf32, #tpu.memory_space<vmem>>, vector<1x128xf32>
    %34 = vector.broadcast %33 : vector<1x128xf32> to vector<8x128xf32>
    %35 = arith.addf %32, %34 : vector<8x128xf32>
    %36 = math.tanh %35 : vector<8x128xf32>
    %37 = arith.truncf %36 : vector<8x128xf32> to vector<8x128xbf16>
    %c0_28 = arith.constant 0 : index
    %c0_29 = arith.constant 0 : index
    %38 = vector.load %arg12[%c0_28, %c0_29] : memref<8x128xbf16, #tpu.memory_space<vmem>>, vector<8x128xbf16>
    tpu.vector_store %arg12[%c0_28, %c0_29], %37 {strides = array<i32>} : memref<8x128xbf16, #tpu.memory_space<vmem>>, vector<8x128xbf16>,
    return
  }
  func.func @transform_0(%arg0: i32) -> (i32, i32) {
    %c0_i32 = arith.constant 0 : i32
    %c0_i32_0 = arith.constant 0 : i32
    return %arg0, %c0_i32 : i32, i32
  }
  func.func @transform_1(%arg0: i32) -> (i32, i32) {
    %c0_i32 = arith.constant 0 : i32
    %c0_i32_0 = arith.constant 0 : i32
    return %arg0, %c0_i32 : i32, i32
  }
  func.func @transform_2(%arg0: i32) -> (i32, i32) {
    %c0_i32 = arith.constant 0 : i32
    %c0_i32_0 = arith.constant 0 : i32
    %c0_i32_1 = arith.constant 0 : i32
    return %c0_i32, %c0_i32_0 : i32, i32
  }
  func.func @transform_3(%arg0: i32) -> (i32, i32) {
    %c0_i32 = arith.constant 0 : i32
    %c0_i32_0 = arith.constant 0 : i32
    %c0_i32_1 = arith.constant 0 : i32
    return %c0_i32, %c0_i32_0 : i32, i32
  }
  func.func @transform_4(%arg0: i32) -> (i32, i32) {
    %c0_i32 = arith.constant 0 : i32
    %c0_i32_0 = arith.constant 0 : i32
    %c0_i32_1 = arith.constant 0 : i32
    return %c0_i32, %c0_i32_0 : i32, i32
  }
  func.func @transform_5(%arg0: i32) -> (i32, i32) {
    %c0_i32 = arith.constant 0 : i32
    %c0_i32_0 = arith.constant 0 : i32
    %c0_i32_1 = arith.constant 0 : i32
    return %c0_i32, %c0_i32_0 : i32, i32
  }
  func.func @transform_6(%arg0: i32) -> (i32, i32) {
    %c0_i32 = arith.constant 0 : i32
    %c0_i32_0 = arith.constant 0 : i32
    %c0_i32_1 = arith.constant 0 : i32
    return %c0_i32, %c0_i32_0 : i32, i32
  }
  func.func @transform_7(%arg0: i32) -> (i32, i32) {
    %c0_i32 = arith.constant 0 : i32
    %c0_i32_0 = arith.constant 0 : i32
    %c0_i32_1 = arith.constant 0 : i32
    return %c0_i32, %c0_i32_0 : i32, i32
  }
  func.func @transform_8(%arg0: i32) -> (i32, i32) {
    %c0_i32 = arith.constant 0 : i32
    %c0_i32_0 = arith.constant 0 : i32
    %c0_i32_1 = arith.constant 0 : i32
    return %c0_i32, %c0_i32_0 : i32, i32
  }
  func.func @transform_9(%arg0: i32) -> (i32, i32) {
    %c0_i32 = arith.constant 0 : i32
    %c0_i32_0 = arith.constant 0 : i32
    %c0_i32_1 = arith.constant 0 : i32
    return %c0_i32, %c0_i32_0 : i32, i32
  }
  func.func @transform_10(%arg0: i32) -> (i32, i32) {
    %c0_i32 = arith.constant 0 : i32
    %c0_i32_0 = arith.constant 0 : i32
    %c0_i32_1 = arith.constant 0 : i32
    return %c0_i32, %c0_i32_0 : i32, i32
  }
  func.func @transform_11(%arg0: i32) -> (i32, i32) {
    %c0_i32 = arith.constant 0 : i32
    %c0_i32_0 = arith.constant 0 : i32
    return %arg0, %c0_i32 : i32, i32
  }
}

</mosaic_0001>

<bundles_post_ra>
// kernel: tpu_custom_call.1
= control target key start
LH: loop header
LB: loop body
LE: loop exit
PB: predicated region body
PF: predicated region fallthrough
CT: control target
= control target key end

     0   :  { %16 = vsyncpa [#allocation3], 0  ;;  %s2098_s0 = inlined_call_operand.hbm [shape: f32[8,32], index: 0, kind: input, shape index: {}]   ;;  %s2099_s1 = inlined_call_operand.hbm [shape: f32[8,8], index: 1, kind: input, shape index: {}]   ;;  %s2100_s2 = inlined_call_operand.hbm [shape: bf16[32,512], index: 2, kind: input, shape index: {}]   ;;  %s2101_s3 = inlined_call_operand.hbm [shape: bf16[8,512], index: 3, kind: input, shape index: {}]   ;;  %s2102_s4 = inlined_call_operand.vmem [shape: f32[1,512], index: 4, kind: input, shape index: {}]   ;;  %s2103_s5 = inlined_call_operand.hbm [shape: bf16[512,256], index: 5, kind: input, shape index: {}]   ;;  %s2104_s6 = inlined_call_operand.vmem [shape: f32[1,256], index: 6, kind: input, shape index: {}]   ;;  %s2105_s7 = inlined_call_operand.hbm [shape: bf16[256,256], index: 7, kind: input, shape index: {}]   ;;  %s2106_s8 = inlined_call_operand.vmem [shape: f32[1,256], index: 8, kind: input, shape index: {}]   ;;  %s2107_s9 = inlined_call_operand.hbm [shape: bf16[256,128], index: 9, kind: input, shape index: {}]   ;;  %s2108_s10 = inlined_call_operand.vmem [shape: f32[1,128], index: 10, kind: input, shape index: {}]   ;;  %s2109_s11 = inlined_call_operand.hbm [shape: bf16[8,128], index: 11, kind: output, shape index: {}]  }
   0x1   :  { %17 = vsyncpa [#allocation6], 0 }
   0x2   :  { %18 = vsyncpa [#allocation9], 0 }
   0x3   :  { %19 = vsyncpa [#allocation12], 0 }
   0x4   :  { %20 = vsyncpa [#allocation4], 0  ;;  %s1877_s17 = smov [#allocation5]   ;;  %s1878_s19 = smov [#allocation8]  }
   0x5   :  { %s37_s18 = sshll.u32 %s1877_s17, 4  ;;  %s59_s20 = sshll.u32 %s1878_s19, 4  ;;  %s38_s18 = int_to_ptr.vmem [resolvable:$true] %s37_s18  ;;  %s60_s20 = int_to_ptr.vmem [resolvable:$true] %s59_s20 }
   0x6   :  { %s1691_s23 = scalar_lea.hbm %s2099_s1, 128 }
   0x7   :  { %p1692_p0 = scmp.ne.s32.totalorder %s2099_s1, %s1691_s23  ;;  %p1695_p1 = scmp.lt.u32.totalorder %s1691_s23, %s2099_s1 }
   0x9   :  { %p1697_p2 = pnand %p1695_p1, %p1692_p0 }
   0xb   :  { %1700 = shalt.err (!%p1697_p2)
}
   0xc   :  { %s1701_s28 = scalar_lea.vmem %s38_s18, 128  ;;  %p1706_p4 = scmp.lt.s32.totalorder %s38_s18, %s38_s18 }
   0xd   :  { %p1702_p3 = scmp.ne.s32.totalorder %s38_s18, %s1701_s28  ;;  %p1707_p5 = scmp.lt.s32.totalorder %s1701_s28, %s1701_s28 }
   0xf   :  { %p1708_p6 = por %p1707_p5, %p1706_p4 }
  0x11   :  { %p1709_p7 = pnand %p1708_p6, %p1702_p3 }
  0x13   :  { %1712 = shalt.err (!%p1709_p7)
}
  0x14   :  { %40 = dma.hbm_to_vmem [thread:$0]  %s2099_s1, 128, %s38_s18, [#allocation6]  }
  0x15   :  { %s1713_s14 = scalar_lea.hbm %s2101_s3, 256 }
  0x16   :  { %p1714_p8 = scmp.ne.s32.totalorder %s2101_s3, %s1713_s14  ;;  %p1717_p9 = scmp.lt.u32.totalorder %s1713_s14, %s2101_s3 }
  0x18   :  { %p1719_p10 = pnand %p1717_p9, %p1714_p8 }
  0x1a   :  { %1722 = shalt.err (!%p1719_p10)
}
  0x1b   :  { %s1723_s21 = scalar_lea.vmem %s60_s20, 256  ;;  %p1728_p12 = scmp.lt.s32.totalorder %s60_s20, %s60_s20 }
  0x1c   :  { %p1724_p11 = scmp.ne.s32.totalorder %s60_s20, %s1723_s21  ;;  %p1729_p13 = scmp.lt.s32.totalorder %s1723_s21, %s1723_s21 }
  0x1e   :  { %p1730_p0 = por %p1729_p13, %p1728_p12 }
  0x20   :  { %p1731_p1 = pnand %p1730_p0, %p1724_p11 }
  0x22   :  { %1734 = shalt.err (!%p1731_p1)
}
  0x23   :  { %62 = dma.hbm_to_vmem [thread:$0]  %s2101_s3, 256, %s60_s20, [#allocation9]  }
  0x24   :  { %s1879_s22 = smov [#allocation11]   ;;  %s1880_s24 = smov [#allocation2]  }
  0x25   :  { %s84_s23 = sshll.u32 %s1879_s22, 4  ;;  %s27_s25 = sshll.u32 %s1880_s24, 4  ;;  %s85_s23 = int_to_ptr.vmem [resolvable:$true] %s84_s23  ;;  %s28_s25 = int_to_ptr.vmem [resolvable:$true] %s27_s25 }
  0x26   :  { %s1735_s28 = scalar_lea.hbm %s2105_s7, 4096 }
  0x27   :  { %p1736_p2 = scmp.ne.s32.totalorder %s2105_s7, %s1735_s28  ;;  %p1739_p3 = scmp.lt.u32.totalorder %s1735_s28, %s2105_s7 }
  0x29   :  { %p1741_p4 = pnand %p1739_p3, %p1736_p2 }
  0x2b   :  { %1744 = shalt.err (!%p1741_p4)
}
  0x2c   :  { %s1745_s3 = scalar_lea.vmem %s85_s23, 4096  ;;  %p1750_p6 = scmp.lt.s32.totalorder %s85_s23, %s85_s23 }
  0x2d   :  { %p1746_p5 = scmp.ne.s32.totalorder %s85_s23, %s1745_s3  ;;  %p1751_p7 = scmp.lt.s32.totalorder %s1745_s3, %s1745_s3 }
  0x2f   :  { %p1752_p8 = por %p1751_p7, %p1750_p6 }
  0x31   :  { %p1753_p9 = pnand %p1752_p8, %p1746_p5 }
  0x33   :  { %1756 = shalt.err (!%p1753_p9)
}
  0x34   :  { %s1881_s20 = smov 128   ;;  %s1882_s14 = smov 8  }
  0x35   :  { %90 = dma.hbm_to_vmem [thread:$0]  %s2105_s7, 4096, %s85_s23, [#allocation12], %s1881_s20, %s1881_s20, %s1882_s14  }
  0x36   :  { %s1757_s21 = scalar_lea.hbm %s2098_s0, 128 }
  0x37   :  { %p1758_p10 = scmp.ne.s32.totalorder %s2098_s0, %s1757_s21  ;;  %p1761_p11 = scmp.lt.u32.totalorder %s1757_s21, %s2098_s0 }
  0x39   :  { %p1763_p12 = pnand %p1761_p11, %p1758_p10 }
  0x3b   :  { %1766 = shalt.err (!%p1763_p12)
}
  0x3c   :  { %s1767_s26 = scalar_lea.vmem %s28_s25, 128  ;;  %p1772_p0 = scmp.lt.s32.totalorder %s28_s25, %s28_s25 }
  0x3d   :  { %p1768_p13 = scmp.ne.s32.totalorder %s28_s25, %s1767_s26  ;;  %p1773_p1 = scmp.lt.s32.totalorder %s1767_s26, %s1767_s26 }
  0x3f   :  { %p1774_p2 = por %p1773_p1, %p1772_p0 }
  0x41   :  { %p1775_p3 = pnand %p1774_p2, %p1768_p13 }
  0x43   :  { %1778 = shalt.err (!%p1775_p3)
}
  0x44   :  { %30 = dma.hbm_to_vmem [thread:$0]  %s2098_s0, 128, %s28_s25, [#allocation3]  }
  0x45   :  { %s1883_s27 = smov [#allocation7]   ;;  %s1779_s12 = scalar_lea.hbm %s2100_s2, 1024 }
  0x46   :  { %s46_s28 = sshll.u32 %s1883_s27, 4  ;;  %p1780_p4 = scmp.ne.s32.totalorder %s2100_s2, %s1779_s12  ;;  %s47_s28 = int_to_ptr.vmem [resolvable:$true] %s46_s28 }
  0x47   :  { %p1783_p5 = scmp.lt.u32.totalorder %s1779_s12, %s2100_s2 }
  0x49   :  { %p1785_p6 = pnand %p1783_p5, %p1780_p4 }
  0x4b   :  { %1788 = shalt.err (!%p1785_p6)
}
  0x4c   :  { %s1789_s17 = scalar_lea.vmem %s47_s28, 1024  ;;  %p1794_p8 = scmp.lt.s32.totalorder %s47_s28, %s47_s28 }
  0x4d   :  { %p1790_p7 = scmp.ne.s32.totalorder %s47_s28, %s1789_s17  ;;  %p1795_p9 = scmp.lt.s32.totalorder %s1789_s17, %s1789_s17 }
  0x4f   :  { %p1796_p10 = por %p1795_p9, %p1794_p8 }
  0x51   :  { %p1797_p11 = pnand %p1796_p10, %p1790_p7 }
  0x53   :  { %1800 = shalt.err (!%p1797_p11)
}
  0x54   :  { %s1884_s0 = smov 256   ;;  %s1885_s25 = smov 16  }
  0x55   :  { %52 = dma.hbm_to_vmem [thread:$0]  %s2100_s2, 1024, %s47_s28, [#allocation6], %s1884_s0, %s1884_s0, %s1885_s25  }
  0x56   :  { %s1886_s1 = smov [#allocation10]   ;;  %s1887_s22 = smov [#allocation13]  }
  0x57   :  { %s70_s18 = sshll.u32 %s1886_s1, 4  ;;  %s98_s24 = sshll.u32 %s1887_s22, 4  ;;  %s71_s18 = int_to_ptr.vmem [resolvable:$true] %s70_s18  ;;  %s99_s24 = int_to_ptr.vmem [resolvable:$true] %s98_s24 }
  0x58   :  { %s1801_s23 = scalar_lea.hbm %s2103_s5, 8192 }
  0x59   :  { %p1802_p12 = scmp.ne.s32.totalorder %s2103_s5, %s1801_s23  ;;  %p1805_p13 = scmp.lt.u32.totalorder %s1801_s23, %s2103_s5 }
  0x5b   :  { %p1807_p0 = pnand %p1805_p13, %p1802_p12 }
  0x5d   :  { %1810 = shalt.err (!%p1807_p0)
}
  0x5e   :  { %s1811_s2 = scalar_lea.vmem %s71_s18, 8192  ;;  %p1816_p2 = scmp.lt.s32.totalorder %s71_s18, %s71_s18 }
  0x5f   :  { %p1812_p1 = scmp.ne.s32.totalorder %s71_s18, %s1811_s2  ;;  %p1817_p3 = scmp.lt.s32.totalorder %s1811_s2, %s1811_s2 }
  0x61   :  { %p1818_p4 = por %p1817_p3, %p1816_p2 }
  0x63   :  { %p1819_p5 = pnand %p1818_p4, %p1812_p1 }
  0x65   :  { %1822 = shalt.err (!%p1819_p5)
}
  0x66   :  { %76 = dma.hbm_to_vmem [thread:$0]  %s2103_s5, 8192, %s71_s18, [#allocation9], %s1881_s20, %s1881_s20, %s1882_s14  }
  0x67   :  { %s1823_s16 = scalar_lea.hbm %s2107_s9, 2048 }
  0x68   :  { %p1824_p6 = scmp.ne.s32.totalorder %s2107_s9, %s1823_s16  ;;  %p1827_p7 = scmp.lt.u32.totalorder %s1823_s16, %s2107_s9 }
  0x6a   :  { %p1829_p8 = pnand %p1827_p7, %p1824_p6 }
  0x6c   :  { %1832 = shalt.err (!%p1829_p8)
}
  0x6d   :  { %s1833_s21 = scalar_lea.vmem %s99_s24, 2048  ;;  %p1838_p10 = scmp.lt.s32.totalorder %s99_s24, %s99_s24 }
  0x6e   :  { %p1834_p9 = scmp.ne.s32.totalorder %s99_s24, %s1833_s21  ;;  %p1839_p11 = scmp.lt.s32.totalorder %s1833_s21, %s1833_s21 }
  0x70   :  { %p1840_p12 = por %p1839_p11, %p1838_p10 }
  0x72   :  { %p1841_p13 = pnand %p1840_p12, %p1834_p9 }
  0x74   :  { %1844 = shalt.err (!%p1841_p13)
}
  0x75   :  { %s1888_s5 = smov 64   ;;  %s1889_s20 = smov 4  }
  0x76   :  { %104 = dma.hbm_to_vmem [thread:$0]  %s2107_s9, 2048, %s99_s24, [#allocation12], %s1888_s5, %s1888_s5, %s1889_s20  }
  0x77   :  { %1867 = dma.done.wait [#allocation3], 128  }
  0x78   :  { %1868 = vsyncadd [#allocation3], 4294967168 }
  0x79   :  { %1869 = dma.done.wait [#allocation6], 1152  }
  0x7a   :  { %1870 = vsyncadd [#allocation6], 4294966144 }
  0x7b   :  { %1871 = dma.done.wait [#allocation9], 8448  }
  0x7c   :  { %1872 = vsyncadd [#allocation9], 4294958848 }
  0x7d   :  { %1873 = dma.done.wait [#allocation12], 6144  }
  0x7e   :  { %1874 = vsyncadd [#allocation12], 4294961152  ;;  %v1890_v0 = vmov 0   ;;  %v141_v1 = vld [vmem:[#allocation8] sm:$0xff]  ;;  %vm157_vm0 = vcmask 1043456   ;;  %v139_v2 = vld [vmem:[#allocation5] sm:$0xff]  ;;  %v380_v50 = vlaneseq }
  0x7f   :  { %202 = vmatprep.mubr.bf16.mxu1 %v1890_v0  ;;  %v142_v3 = vld [vmem:[#allocation8 + $0x8] sm:$0xff]  ;;  %v1340_v4 = vcombine.high %v141_v1, %v141_v1  ;;  %v1339_v5 = vcombine.low %v141_v1, %v141_v1  ;;  %v140_v9 = vpack.c.bf16 %v139_v2, %v139_v2  ;;  %vm153_vm1 = vcmask 64512   ;;  %v1519_v11 = vld [vmem:[#allocation7 + $0x4] ss:$16 sps:$4 sm:$0xff]   ;;  %v1531_v13 = vld [vmem:[#allocation10] ss:$8 sps:$4 sm:$0xff]  }
  0x80   :  { %v1342_v6 = vcombine.high %v142_v3, %v142_v3  ;;  %v1341_v7 = vcombine.low %v142_v3, %v142_v3  ;;  %v1529_v12 = vld [vmem:[#allocation10 + $0x4] ss:$8 sps:$4 sm:$0xff]   ;;  %v1532_v14 = vld [vmem:[#allocation10 + $0x14] ss:$8 sps:$4 sm:$0xff]   ;;  %v1534_v15 = vld [vmem:[#allocation10 + $0x10] ss:$8 sps:$4 sm:$0xff]  }
  0x81   :  { %1343 = vmatprep.subr.msk.bf16.mxu1 %vm157_vm0, %v1340_v4  ;;  %v159_v8 = vsel %vm157_vm0, %v1339_v5, 0  ;;  %808 = vmatprep.subr.bf16.mxu0 %v1529_v12  ;;  %v1535_v16 = vld [vmem:[#allocation10 + $0x24] ss:$8 sps:$4 sm:$0xff]   ;;  %v1517_v17 = vld [vmem:[#allocation7] ss:$16 sps:$4 sm:$0xff]   ;;  %vm292_vm2 = vcmask 261120  }
  0x82   :  { %171 = vmatpush1.bf16.msra.mxu1 %v159_v8  ;;  %v165_v10 = vsel %vm157_vm0, %v1341_v7, 0  ;;  %809 = vmatpush1.bf16.msra.mxu0 %v1531_v13  ;;  %v1522_v18 = vld [vmem:[#allocation7 + $0x24] ss:$16 sps:$4 sm:$0xff]   ;;  %v1537_v19 = vld [vmem:[#allocation10 + $0x20] ss:$8 sps:$4 sm:$0xff]   ;;  %v2046_v53 = vshrl.u32 %v380_v50, 7 }
  0x83   :  { %1345 = vmatprep.subr.msk.bf16.mxu1 %vm157_vm0, %v1342_v6  ;;  %810 = vmatprep.subr.bf16.mxu0 %v1532_v14  ;;  %v1520_v20 = vld [vmem:[#allocation7 + $0x20] ss:$16 sps:$4 sm:$0xff]   ;;  %v1538_v21 = vld [vmem:[#allocation10 + $0x34] ss:$8 sps:$4 sm:$0xff]   ;;  %v1523_v24 = vld [vmem:[#allocation7 + $0x8] ss:$16 sps:$4 sm:$0xff]  }
  0x84   :  { %v129_v22 = vld [vmem:[#allocation2] sm:$0xff]  ;;  %v1525_v23 = vld [vmem:[#allocation7 + $0xc] ss:$16 sps:$4 sm:$0xff]   ;;  %v1540_v25 = vld [vmem:[#allocation10 + $0x30] ss:$8 sps:$4 sm:$0xff]   ;;  %v390_v55 = vsub.s32 2, %v2046_v53 }
  0x85   :  { %1344 = vmatmul.mubr.msk.bf16.vlgmr.msra.gmra.mrb[0].mxu1 %vm153_vm1, %v140_v9  ;;  %v130_v26 = vpack.c.bf16 %v129_v22, %v129_v22  ;;  %v1528_v27 = vld [vmem:[#allocation7 + $0x2c] ss:$16 sps:$4 sm:$0xff]   ;;  %v1543_v29 = vld [vmem:[#allocation10 + $0x40] ss:$8 sps:$4 sm:$0xff]   ;;  %v1546_v32 = vld [vmem:[#allocation10 + $0x50] ss:$8 sps:$4 sm:$0xff]  }
  0x86   :  { %212 = vmatpush1.bf16.msra.mxu1 %v165_v10  ;;  %243 = vmatprep.mubr.bf16.mxu1 %v1890_v0  ;;  %v1541_v28 = vld [vmem:[#allocation10 + $0x44] ss:$8 sps:$4 sm:$0xff]   ;;  %v1544_v30 = vld [vmem:[#allocation10 + $0x54] ss:$8 sps:$4 sm:$0xff]   ;;  %v1526_v31 = vld [vmem:[#allocation7 + $0x28] ss:$16 sps:$4 sm:$0xff]  }
  0x87   :  { %296 = vmatprep.subr.bf16.mxu1 %v1519_v11  ;;  %811 = vmatpush1.bf16.msra.mxu0 %v1534_v15  ;;  %v1547_v33 = vld [vmem:[#allocation10 + $0x64] ss:$8 sps:$4 sm:$0xff]   ;;  %v1549_v34 = vld [vmem:[#allocation10 + $0x60] ss:$8 sps:$4 sm:$0xff]   ;;  %v1550_v35 = vld [vmem:[#allocation10 + $0x74] ss:$8 sps:$4 sm:$0xff]  }
  0x88   :  { %812 = vmatprep.subr.bf16.mxu0 %v1535_v16  ;;  %v1552_v36 = vld [vmem:[#allocation10 + $0x70] ss:$8 sps:$4 sm:$0xff]   ;;  %v1553_v37 = vld [vmem:[#allocation10 + $0x84] ss:$8 sps:$4 sm:$0xff]   ;;  %v1555_v38 = vld [vmem:[#allocation10 + $0x80] ss:$8 sps:$4 sm:$0xff]  }
  0x89   :  { %v1556_v39 = vld [vmem:[#allocation10 + $0x94] ss:$8 sps:$4 sm:$0xff]   ;;  %v1558_v40 = vld [vmem:[#allocation10 + $0x90] ss:$8 sps:$4 sm:$0xff]   ;;  %v1559_v41 = vld [vmem:[#allocation10 + $0xa4] ss:$8 sps:$4 sm:$0xff]  }
  0x8a   :  { %v1561_v42 = vld [vmem:[#allocation10 + $0xa0] ss:$8 sps:$4 sm:$0xff]   ;;  %v1562_v43 = vld [vmem:[#allocation10 + $0xb4] ss:$8 sps:$4 sm:$0xff]   ;;  %v1564_v44 = vld [vmem:[#allocation10 + $0xb0] ss:$8 sps:$4 sm:$0xff]  }
  0x8b   :  { %813 = vmatpush1.bf16.msra.mxu0 %v1537_v19  ;;  %v1565_v45 = vld [vmem:[#allocation10 + $0xc4] ss:$8 sps:$4 sm:$0xff]   ;;  %v1567_v46 = vld [vmem:[#allocation10 + $0xc0] ss:$8 sps:$4 sm:$0xff]   ;;  %v1568_v47 = vld [vmem:[#allocation10 + $0xd4] ss:$8 sps:$4 sm:$0xff]  }
  0x8c   :  { %814 = vmatprep.subr.bf16.mxu0 %v1538_v21  ;;  %v1570_v48 = vld [vmem:[#allocation10 + $0xd0] ss:$8 sps:$4 sm:$0xff]   ;;  %v1571_v49 = vld [vmem:[#allocation10 + $0xe4] ss:$8 sps:$4 sm:$0xff]   ;;  %v1573_v51 = vld [vmem:[#allocation10 + $0xe0] ss:$8 sps:$4 sm:$0xff]  }
  0x8d   :  { %1346 = vmatmul.mubr.msk.bf16.vlgmr.msra.gmra.mrb[4].mxu1 %vm153_vm1, %v140_v9  ;;  %v1574_v52 = vld [vmem:[#allocation10 + $0xf4] ss:$8 sps:$4 sm:$0xff]   ;;  %v1576_v54 = vld [vmem:[#allocation10 + $0xf0] ss:$8 sps:$4 sm:$0xff]   ;;  %v2052_v56 = vld [vmem:[%s2102_s4] sm:$0xf] }
  0x8e   :  { %297 = vmatpush1.bf16.msra.mxu1 %v1517_v17  ;;  %328 = vmatprep.mubr.bf16.mxu1 %v1890_v0  ;;  %v1579_v57 = vld [vmem:[#allocation10 + $0x104] ss:$8 sps:$4 sm:$0xff]   ;;  %v2055_v58 = vrot.slane %v2052_v56, %v390_v55  ;;  %v1625_v59 = vld [vmem:[#allocation11] ss:$8 sps:$4 sm:$0xff]   ;;  %v1630_v61 = vld [vmem:[#allocation11 + $0x14] ss:$8 sps:$4 sm:$0xff]  }
  0x8f   :  { %298 = vmatprep.subr.bf16.mxu1 %v1522_v18  ;;  %815 = vmatpush1.bf16.msra.mxu0 %v1540_v25  ;;  %v1627_v60 = vld [vmem:[#allocation11 + $0x4] ss:$8 sps:$4 sm:$0xff]   ;;  %v1628_v62 = vld [vmem:[#allocation11 + $0x10] ss:$8 sps:$4 sm:$0xff]   ;;  %v1636_v1 = vld [vmem:[#allocation11 + $0x34] ss:$8 sps:$4 sm:$0xff]  }
  0x90   :  { %816 = vmatprep.subr.bf16.mxu0 %v1541_v28  ;;  %v1633_v63 = vld [vmem:[#allocation11 + $0x24] ss:$8 sps:$4 sm:$0xff]   ;;  %v1634_v2 = vld [vmem:[#allocation11 + $0x30] ss:$8 sps:$4 sm:$0xff]   ;;  %v1637_v4 = vld [vmem:[#allocation11 + $0x40] ss:$8 sps:$4 sm:$0xff]  }
  0x91   :  { %v1639_v3 = vld [vmem:[#allocation11 + $0x44] ss:$8 sps:$4 sm:$0xff]   ;;  %v1642_v5 = vld [vmem:[#allocation11 + $0x54] ss:$8 sps:$4 sm:$0xff]   ;;  %v1640_v6 = vld [vmem:[#allocation11 + $0x50] ss:$8 sps:$4 sm:$0xff]  }
  0x92   :  { %299 = vmatpush1.bf16.msra.mxu1 %v1520_v20  ;;  %v1645_v7 = vld [vmem:[#allocation11 + $0x64] ss:$8 sps:$4 sm:$0xff]   ;;  %v1643_v8 = vld [vmem:[#allocation11 + $0x60] ss:$8 sps:$4 sm:$0xff]   ;;  %v1648_v9 = vld [vmem:[#allocation11 + $0x74] ss:$8 sps:$4 sm:$0xff]  }
  0x93   :  { %337 = vmatprep.subr.bf16.mxu1 %v1525_v23  ;;  %817 = vmatpush1.bf16.msra.mxu0 %v1543_v29  ;;  %v1646_v10 = vld [vmem:[#allocation11 + $0x70] ss:$8 sps:$4 sm:$0xff]   ;;  %v1651_v11 = vld [vmem:[#allocation11 + $0x84] ss:$8 sps:$4 sm:$0xff]   ;;  %v1649_v12 = vld [vmem:[#allocation11 + $0x80] ss:$8 sps:$4 sm:$0xff]  }
  0x94   :  { %818 = vmatprep.subr.bf16.mxu0 %v1544_v30  ;;  %v1654_v13 = vld [vmem:[#allocation11 + $0x94] ss:$8 sps:$4 sm:$0xff]   ;;  %v1652_v14 = vld [vmem:[#allocation11 + $0x90] ss:$8 sps:$4 sm:$0xff]   ;;  %v1657_v15 = vld [vmem:[#allocation11 + $0xa4] ss:$8 sps:$4 sm:$0xff]  }
  0x95   :  { %1355 = vmatmul.mubr.msk.bf16.vlgmr.msra.gmra.mrb[8].mxu1 %vm292_vm2, %v130_v26  ;;  %v1655_v19 = vld [vmem:[#allocation11 + $0xa0] ss:$8 sps:$4 sm:$0xff]   ;;  %v1660_v21 = vld [vmem:[#allocation11 + $0xb4] ss:$8 sps:$4 sm:$0xff]   ;;  %v1658_v22 = vld [vmem:[#allocation11 + $0xb0] ss:$8 sps:$4 sm:$0xff]  }
  0x96   :  { %338 = vmatpush1.bf16.msra.mxu1 %v1523_v24  ;;  %369 = vmatprep.mubr.bf16.mxu1 %v1890_v0  ;;  %v1631_v0 = vld [vmem:[#allocation11 + $0x20] ss:$8 sps:$4 sm:$0xff]   ;;  %v1663_v23 = vld [vmem:[#allocation11 + $0xc4] ss:$8 sps:$4 sm:$0xff]   ;;  %v2058_v29 = vsub.s32 0, %v2046_v53 }
  0x97   :  { %339 = vmatprep.subr.bf16.mxu1 %v1528_v27  ;;  %819 = vmatpush1.bf16.msra.mxu0 %v1546_v32  ;;  %v1661_v27 = vld [vmem:[#allocation11 + $0xc0] ss:$8 sps:$4 sm:$0xff]   ;;  %v1666_v30 = vld [vmem:[#allocation11 + $0xd4] ss:$8 sps:$4 sm:$0xff]   ;;  %v1664_v32 = vld [vmem:[#allocation11 + $0xd0] ss:$8 sps:$4 sm:$0xff]  }
  0x98   :  { %820 = vmatprep.subr.bf16.mxu0 %v1547_v33  ;;  %v383_v33 = vrot.slane %v2052_v56, %v2058_v29 }
  0x9a   :  { %340 = vmatpush1.bf16.msra.mxu1 %v1526_v31  ;;  %v2061_v31 = vsub.s32 1, %v2046_v53 }
  0x9b   :  { %821 = vmatpush1.bf16.msra.mxu0 %v1549_v34  ;;  %1098 = vmatprep.subr.bf16.mxu1 %v1627_v60 }
  0x9c   :  { %822 = vmatprep.subr.bf16.mxu0 %v1550_v35  ;;  %v387_v35 = vrot.slane %v2052_v56, %v2061_v31 }
  0x9d   :  { %1356 = vmatmul.mubr.msk.bf16.vlgmr.msra.gmra.mrb[12].mxu1 %vm292_vm2, %v130_v26 }
  0x9e   :  { %1099 = vmatpush1.bf16.msra.mxu1 %v1625_v59 }
  0x9f   :  { %823 = vmatpush1.bf16.msra.mxu0 %v1552_v36  ;;  %1100 = vmatprep.subr.bf16.mxu1 %v1630_v61  ;;  %v1580_v61 = vld [vmem:[#allocation10 + $0x110] ss:$8 sps:$4 sm:$0xff]  }
  0xa0   :  { %824 = vmatprep.subr.bf16.mxu0 %v1553_v37 }
  0xa2   :  { %1101 = vmatpush1.bf16.msra.mxu1 %v1628_v62  ;;  %v1585_v62 = vld [vmem:[#allocation10 + $0x124] ss:$8 sps:$4 sm:$0xff]  }
  0xa3   :  { %825 = vmatpush1.bf16.msra.mxu0 %v1555_v38  ;;  %1102 = vmatprep.subr.bf16.mxu1 %v1633_v63 }
  0xa4   :  { %826 = vmatprep.subr.bf16.mxu0 %v1556_v39 }
  0xa6   :  { %1103 = vmatpush1.bf16.msra.mxu1 %v1631_v0  ;;  %v1583_v0 = vld [vmem:[#allocation10 + $0x120] ss:$8 sps:$4 sm:$0xff]  }
  0xa7   :  { %827 = vmatpush1.bf16.msra.mxu0 %v1558_v40  ;;  %1104 = vmatprep.subr.bf16.mxu1 %v1636_v1  ;;  %v1588_v1 = vld [vmem:[#allocation10 + $0x134] ss:$8 sps:$4 sm:$0xff]  }
  0xa8   :  { %828 = vmatprep.subr.bf16.mxu0 %v1559_v41 }
  0xaa   :  { %1105 = vmatpush1.bf16.msra.mxu1 %v1634_v2  ;;  %v1586_v2 = vld [vmem:[#allocation10 + $0x130] ss:$8 sps:$4 sm:$0xff]  }
  0xab   :  { %829 = vmatpush1.bf16.msra.mxu0 %v1561_v42  ;;  %1106 = vmatprep.subr.bf16.mxu1 %v1639_v3  ;;  %v394_v42 = vsub.s32 3, %v2046_v53  ;;  %v1591_v3 = vld [vmem:[#allocation10 + $0x144] ss:$8 sps:$4 sm:$0xff]  }
  0xac   :  { %830 = vmatprep.subr.bf16.mxu0 %v1562_v43 }
  0xae   :  { %1107 = vmatpush1.bf16.msra.mxu1 %v1637_v4  ;;  %v1594_v4 = vld [vmem:[#allocation10 + $0x154] ss:$8 sps:$4 sm:$0xff]  }
  0xaf   :  { %831 = vmatpush1.bf16.msra.mxu0 %v1564_v44  ;;  %1108 = vmatprep.subr.bf16.mxu1 %v1642_v5  ;;  %v1592_v5 = vld [vmem:[#allocation10 + $0x150] ss:$8 sps:$4 sm:$0xff]  }
  0xb0   :  { %832 = vmatprep.subr.bf16.mxu0 %v1565_v45 }
  0xb2   :  { %1109 = vmatpush1.bf16.msra.mxu1 %v1640_v6  ;;  %v1597_v6 = vld [vmem:[#allocation10 + $0x164] ss:$8 sps:$4 sm:$0xff]  }
  0xb3   :  { %833 = vmatpush1.bf16.msra.mxu0 %v1567_v46  ;;  %1110 = vmatprep.subr.bf16.mxu1 %v1645_v7  ;;  %v1595_v7 = vld [vmem:[#allocation10 + $0x160] ss:$8 sps:$4 sm:$0xff]  }
  0xb4   :  { %834 = vmatprep.subr.bf16.mxu0 %v1568_v47  ;;  %v395_v47 = vrot.slane %v2052_v56, %v394_v42 }
  0xb6   :  { %1111 = vmatpush1.bf16.msra.mxu1 %v1643_v8  ;;  %v1600_v8 = vld [vmem:[#allocation10 + $0x174] ss:$8 sps:$4 sm:$0xff]  }
  0xb7   :  { %835 = vmatpush1.bf16.msra.mxu0 %v1570_v48  ;;  %1112 = vmatprep.subr.bf16.mxu1 %v1648_v9  ;;  %v1598_v9 = vld [vmem:[#allocation10 + $0x170] ss:$8 sps:$4 sm:$0xff]  }
  0xb8   :  { %836 = vmatprep.subr.bf16.mxu0 %v1571_v49  ;;  %v1577_v49 = vld [vmem:[#allocation10 + $0x100] ss:$8 sps:$4 sm:$0xff]  }
  0xba   :  { %1113 = vmatpush1.bf16.msra.mxu1 %v1646_v10  ;;  %v1603_v10 = vld [vmem:[#allocation10 + $0x184] ss:$8 sps:$4 sm:$0xff]  }
  0xbb   :  { %837 = vmatpush1.bf16.msra.mxu0 %v1573_v51  ;;  %1114 = vmatprep.subr.bf16.mxu1 %v1651_v11  ;;  %v1601_v11 = vld [vmem:[#allocation10 + $0x180] ss:$8 sps:$4 sm:$0xff]  }
  0xbc   :  { %838 = vmatprep.subr.bf16.mxu0 %v1574_v52 }
  0xbe   :  { %1115 = vmatpush1.bf16.msra.mxu1 %v1649_v12  ;;  %v1606_v12 = vld [vmem:[#allocation10 + $0x194] ss:$8 sps:$4 sm:$0xff]  }
  0xbf   :  { %839 = vmatpush1.bf16.msra.mxu0 %v1576_v54  ;;  %1116 = vmatprep.subr.bf16.mxu1 %v1654_v13  ;;  %v1582_v54 = vld [vmem:[#allocation10 + $0x114] ss:$8 sps:$4 sm:$0xff]   ;;  %v1604_v13 = vld [vmem:[#allocation10 + $0x190] ss:$8 sps:$4 sm:$0xff]  }
  0xc0   :  { %849 = vmatprep.subr.bf16.mxu0 %v1579_v57 }
  0xc2   :  { %1117 = vmatpush1.bf16.msra.mxu1 %v1652_v14  ;;  %v1609_v14 = vld [vmem:[#allocation10 + $0x1a4] ss:$8 sps:$4 sm:$0xff]  }
  0xc3   :  { %1118 = vmatprep.subr.bf16.mxu1 %v1657_v15  ;;  %v1607_v15 = vld [vmem:[#allocation10 + $0x1a0] ss:$8 sps:$4 sm:$0xff]  }
  0xc6   :  { %1119 = vmatpush1.bf16.msra.mxu1 %v1655_v19  ;;  %v1613_v19 = vld [vmem:[#allocation10 + $0x1c0] ss:$8 sps:$4 sm:$0xff]  }
  0xc7   :  { %1120 = vmatprep.subr.bf16.mxu1 %v1660_v21  ;;  %v1616_v21 = vld [vmem:[#allocation10 + $0x1d0] ss:$8 sps:$4 sm:$0xff]  }
  0xca   :  { %1121 = vmatpush1.bf16.msra.mxu1 %v1658_v22  ;;  %v1621_v22 = vld [vmem:[#allocation10 + $0x1e4] ss:$8 sps:$4 sm:$0xff]  }
  0xcb   :  { %1122 = vmatprep.subr.bf16.mxu1 %v1663_v23  ;;  %v1619_v23 = vld [vmem:[#allocation10 + $0x1e0] ss:$8 sps:$4 sm:$0xff]  }
  0xce   :  { %1123 = vmatpush1.bf16.msra.mxu1 %v1661_v27 }
  0xcf   :  { %1124 = vmatprep.subr.bf16.mxu1 %v1666_v30  ;;  %v1667_v30 = vld [vmem:[#allocation11 + $0xe0] ss:$8 sps:$4 sm:$0xff]  }
  0xd2   :  { %1125 = vmatpush1.bf16.msra.mxu1 %v1664_v32  ;;  %v1672_v32 = vld [vmem:[#allocation11 + $0xf4] ss:$8 sps:$4 sm:$0xff]  }
 0x158   :  { %v204_v16 = vpop.f32.mrb[0].mxu1 }
 0x159   :  { %v206_v17 = vpop.f32.mrb[1].mxu1 }
 0x15a   :  { %v208_v18 = vpop.f32.mrb[2].mxu1 }
 0x15b   :  { %v209_v20 = vpop.f32.mrb[3].mxu1  ;;  %v1615_v18 = vld [vmem:[#allocation10 + $0x1c4] ss:$8 sps:$4 sm:$0xff]  }
 0x15c   :  { %v1618_v20 = vld [vmem:[#allocation10 + $0x1d4] ss:$8 sps:$4 sm:$0xff]  }
 0x160   :  { %v245_v24 = vpop.f32.mrb[4].mxu1 }
 0x161   :  { %v247_v25 = vpop.f32.mrb[5].mxu1 }
 0x162   :  { %v249_v26 = vpop.f32.mrb[6].mxu1 }
 0x163   :  { %v250_v28 = vpop.f32.mrb[7].mxu1 }
 0x164   :  { %v1669_v28 = vld [vmem:[#allocation11 + $0xe4] ss:$8 sps:$4 sm:$0xff]  }
 0x165   :  { %1126 = vmatprep.subr.bf16.mxu1 %v1669_v28 }
 0x166   :  { %1127 = vmatpush1.bf16.msra.mxu1 %v1667_v30 }
 0x167   :  { %1128 = vmatprep.subr.bf16.mxu1 %v1672_v32 }
 0x168   :  { %v330_v34 = vpop.f32.mrb[8].mxu1 }
 0x169   :  { %v331_v36 = vadd.f32 %v330_v34, %v204_v16  ;;  %v332_v37 = vpop.f32.mrb[9].mxu1  ;;  %v1612_v16 = vld [vmem:[#allocation10 + $0x1b4] ss:$8 sps:$4 sm:$0xff]   ;;  %v1673_v34 = vld [vmem:[#allocation13 + $0x40] sm:$0xff]  }
 0x16a   :  { %v333_v38 = vadd.f32 %v332_v37, %v206_v17  ;;  %v334_v39 = vpop.f32.mrb[10].mxu1  ;;  %v1610_v17 = vld [vmem:[#allocation10 + $0x1b0] ss:$8 sps:$4 sm:$0xff]  }
 0x16b   :  { %v400_v40 = vadd.f32 %v383_v33, %v331_v36  ;;  %v335_v41 = vpop.f32.mrb[11].mxu1  ;;  %v1670_v33 = vld [vmem:[#allocation11 + $0xf0] ss:$8 sps:$4 sm:$0xff]  }
 0x16c   :  { %v401_v43 = vadd.f32 %v387_v35, %v333_v38  ;;  %1129 = vmatpush1.bf16.msra.mxu1 %v1670_v33  ;;  %v476_v35 = vld [vmem:[%s2104_s6] sm:$0x3] }
 0x16d   :  { %v404_v44 = vmax.f32 %v400_v40, 0.0  ;;  %1470 = vmatprep.subr.bf16.mxu1 %v1673_v34  ;;  %v481_v36 = vrot.slane %v476_v35, %v2058_v29  ;;  %v485_v37 = vrot.slane %v476_v35, %v2061_v31 }
 0x16e   :  { %v405_v45 = vmax.f32 %v401_v43, 0.0 }
 0x16f   :  { %v408_v50 = vpack.c.bf16 %v404_v44, %v404_v44 }
 0x170   :  { %v371_v46 = vpop.f32.mrb[12].mxu1  ;;  %v409_v48 = vpack.c.bf16 %v405_v45, %v405_v45 }
 0x171   :  { %v372_v51 = vadd.f32 %v371_v46, %v245_v24  ;;  %v373_v52 = vpop.f32.mrb[13].mxu1  ;;  %v1624_v24 = vld [vmem:[#allocation10 + $0x1f4] ss:$8 sps:$4 sm:$0xff]  }
 0x172   :  { %v374_v55 = vadd.f32 %v373_v52, %v247_v25  ;;  %840 = vmatprep.mubr.bf16.mxu0 %v409_v48  ;;  %v375_v57 = vpop.f32.mrb[14].mxu1  ;;  %v1622_v25 = vld [vmem:[#allocation10 + $0x1f0] ss:$8 sps:$4 sm:$0xff]  }
 0x173   :  { %v2070_v59 = vadd.f32 %v2055_v58, %v372_v51  ;;  %841 = vmatmul.mubr.bf16.vlgmr.msra.gmra.mrb[0].mxu0 %v408_v50  ;;  %v376_v53 = vpop.f32.mrb[15].mxu1  ;;  %v1589_v58 = vld [vmem:[#allocation10 + $0x140] ss:$8 sps:$4 sm:$0xff]   ;;  %v1677_v51 = vld [vmem:[#allocation13 + $0x50] sm:$0xff]  }
 0x174   :  { %v403_v60 = vadd.f32 %v395_v47, %v374_v55  ;;  %850 = vmatpush1.bf16.msra.mxu0 %v1577_v49  ;;  %v1674_v47 = vld [vmem:[#allocation13] sm:$0xff]   ;;  %v1675_v49 = vld [vmem:[#allocation13 + $0x48] sm:$0xff]   ;;  %v1678_v52 = vld [vmem:[#allocation13 + $0x10] sm:$0xff]  }
 0x175   :  { %851 = vmatprep.subr.bf16.mxu0 %v1582_v54  ;;  %v406_v26 = vmax.f32 %v2070_v59, 0.0  ;;  %v1676_v50 = vld [vmem:[#allocation13 + $0x8] sm:$0xff]   ;;  %v1679_v54 = vld [vmem:[#allocation13 + $0x58] sm:$0xff]   ;;  %v1681_v57 = vld [vmem:[#allocation13 + $0x60] sm:$0xff]  }
 0x176   :  { %v407_v56 = vmax.f32 %v403_v60, 0.0  ;;  %v1680_v55 = vld [vmem:[#allocation13 + $0x18] sm:$0xff]   ;;  %v1682_v59 = vld [vmem:[#allocation13 + $0x20] sm:$0xff]   ;;  %v1683_v53 = vld [vmem:[#allocation13 + $0x68] sm:$0xff]  }
 0x177   :  { %v410_v27 = vpack.c.bf16 %v406_v26, %v406_v26  ;;  %v1684_v60 = vld [vmem:[#allocation13 + $0x28] sm:$0xff]  }
 0x178   :  { %v411_v63 = vpack.c.bf16 %v407_v56, %v407_v56  ;;  %852 = vmatpush1.bf16.msra.mxu0 %v1580_v61  ;;  %v1685_v61 = vld [vmem:[#allocation13 + $0x70] sm:$0xff]   ;;  %v1687_v56 = vld [vmem:[#allocation13 + $0x78] sm:$0xff]  }
 0x179   :  { %853 = vmatprep.subr.bf16.mxu0 %v1585_v62  ;;  %v1686_v62 = vld [vmem:[#allocation13 + $0x30] sm:$0xff]  }
 0x17a   :  { %881 = vmatprep.mubr.bf16.mxu0 %v411_v63  ;;  %v1688_v63 = vld [vmem:[#allocation13 + $0x38] sm:$0xff]  }
 0x17c   :  { %854 = vmatpush1.bf16.msra.mxu0 %v1583_v0  ;;  %v926_v0 = vld [vmem:[%s2106_s8] sm:$0x3]  ;;  %s1891_s8 = smov [#allocation14]  }
 0x17d   :  { %855 = vmatprep.subr.bf16.mxu0 %v1588_v1  ;;  %v931_v1 = vrot.slane %v926_v0, %v2058_v29  ;;  %s1327_s23 = sshll.u32 %s1891_s8, 4  ;;  %s1328_s23 = int_to_ptr.vmem [resolvable:$true] %s1327_s23 }
 0x17e   :  { %s1845_s27 = scalar_lea.vmem %s1328_s23, 64  ;;  %p1850_p1 = scmp.lt.s32.totalorder %s1328_s23, %s1328_s23 }
 0x17f   :  { %p1846_p0 = scmp.ne.s32.totalorder %s1328_s23, %s1845_s27  ;;  %p1851_p2 = scmp.lt.s32.totalorder %s1845_s27, %s1845_s27 }
 0x180   :  { %856 = vmatpush1.bf16.msra.mxu0 %v1586_v2  ;;  %v935_v2 = vrot.slane %v926_v0, %v2061_v31 }
 0x181   :  { %857 = vmatprep.subr.bf16.mxu0 %v1591_v3  ;;  %p1852_p3 = por %p1851_p2, %p1850_p1 }
 0x183   :  { %p1853_p4 = pnand %p1852_p3, %p1846_p0 }
 0x184   :  { %858 = vmatpush1.bf16.msra.mxu0 %v1589_v58 }
 0x185   :  { %859 = vmatprep.subr.bf16.mxu0 %v1594_v4 }
 0x188   :  { %860 = vmatpush1.bf16.msra.mxu0 %v1592_v5 }
 0x189   :  { %861 = vmatprep.subr.bf16.mxu0 %v1597_v6 }
 0x18c   :  { %862 = vmatpush1.bf16.msra.mxu0 %v1595_v7 }
 0x18d   :  { %863 = vmatprep.subr.bf16.mxu0 %v1600_v8 }
 0x190   :  { %864 = vmatpush1.bf16.msra.mxu0 %v1598_v9 }
 0x191   :  { %865 = vmatprep.subr.bf16.mxu0 %v1603_v10 }
 0x194   :  { %866 = vmatpush1.bf16.msra.mxu0 %v1601_v11 }
 0x195   :  { %867 = vmatprep.subr.bf16.mxu0 %v1606_v12 }
 0x198   :  { %868 = vmatpush1.bf16.msra.mxu0 %v1604_v13  ;;  %v1453_v13 = vld [vmem:[%s2108_s10] ss:$0 sm:$0xff] }
 0x199   :  { %869 = vmatprep.subr.bf16.mxu0 %v1609_v14 }
 0x19c   :  { %870 = vmatpush1.bf16.msra.mxu0 %v1607_v15 }
 0x19d   :  { %871 = vmatprep.subr.bf16.mxu0 %v1612_v16 }
 0x1a0   :  { %872 = vmatpush1.bf16.msra.mxu0 %v1610_v17 }
 0x1a1   :  { %873 = vmatprep.subr.bf16.mxu0 %v1615_v18 }
 0x1a4   :  { %874 = vmatpush1.bf16.msra.mxu0 %v1613_v19 }
 0x1a5   :  { %875 = vmatprep.subr.bf16.mxu0 %v1618_v20 }
 0x1a8   :  { %876 = vmatpush1.bf16.msra.mxu0 %v1616_v21 }
 0x1a9   :  { %877 = vmatprep.subr.bf16.mxu0 %v1621_v22 }
 0x1ac   :  { %878 = vmatpush1.bf16.msra.mxu0 %v1619_v23 }
 0x1ad   :  { %879 = vmatprep.subr.bf16.mxu0 %v1624_v24 }
 0x1b0   :  { %880 = vmatpush1.bf16.msra.mxu0 %v1622_v25 }
 0x1b3   :  { %882 = vmatmul.mubr.bf16.vlgmr.msra.gmra.mrb[0].mxu0 %v410_v27 }
 0x286   :  { %v883_v38 = vpop.f32.mrb[0].mxu0 }
 0x287   :  { %v1492_v39 = vadd.f32 %v883_v38, %v481_v36  ;;  %v885_v40 = vpop.f32.mrb[1].mxu0 }
 0x288   :  { %v1493_v41 = vadd.f32 %v885_v40, %v485_v37  ;;  %v887_v42 = vpop.f32.mrb[2].mxu0 }
 0x289   :  { %v890_v43 = vmax.f32 %v1492_v39, 0.0  ;;  %v888_v44 = vpop.f32.mrb[3].mxu0 }
 0x28a   :  { %v891_v45 = vmax.f32 %v1493_v41, 0.0 }
 0x28b   :  { %v892_v48 = vpack.c.bf16 %v890_v43, %v890_v43 }
 0x28c   :  { %v893_v46 = vpack.c.bf16 %v891_v45, %v891_v45 }
 0x28e   :  { %1130 = vmatprep.mubr.bf16.mxu1 %v893_v46 }
 0x28f   :  { %1131 = vmatmul.mubr.bf16.vlgmr.msra.gmra.mrb[16].mxu1 %v892_v48 }
 0x290   :  { %1471 = vmatpush3.bf16.msra.mxu1 %v1674_v47 }
 0x291   :  { %1472 = vmatprep.subr.bf16.mxu1 %v1675_v49 }
 0x294   :  { %1473 = vmatpush3.bf16.msra.mxu1 %v1676_v50 }
 0x295   :  { %1474 = vmatprep.subr.bf16.mxu1 %v1677_v51 }
 0x298   :  { %1475 = vmatpush3.bf16.msra.mxu1 %v1678_v52 }
 0x299   :  { %1476 = vmatprep.subr.bf16.mxu1 %v1679_v54 }
 0x29c   :  { %1477 = vmatpush3.bf16.msra.mxu1 %v1680_v55 }
 0x29d   :  { %1478 = vmatprep.subr.bf16.mxu1 %v1681_v57 }
 0x2a0   :  { %1479 = vmatpush3.bf16.msra.mxu1 %v1682_v59 }
 0x2a1   :  { %1480 = vmatprep.subr.bf16.mxu1 %v1683_v53 }
 0x2a4   :  { %1481 = vmatpush3.bf16.msra.mxu1 %v1684_v60 }
 0x2a5   :  { %1482 = vmatprep.subr.bf16.mxu1 %v1685_v61 }
 0x2a8   :  { %1483 = vmatpush3.bf16.msra.mxu1 %v1686_v62 }
 0x2a9   :  { %1484 = vmatprep.subr.bf16.mxu1 %v1687_v56 }
 0x2ac   :  { %1485 = vmatpush3.bf16.msra.mxu1 %v1688_v63 }
 0x362   :  { %v1132_v3 = vpop.f32.mrb[16].mxu1 }
 0x363   :  { %v1133_v58 = vadd.f32 %v1132_v3, %v931_v1  ;;  %v1134_v4 = vpop.f32.mrb[17].mxu1 }
 0x364   :  { %v1135_v5 = vadd.f32 %v1134_v4, %v935_v2  ;;  %v1136_v6 = vpop.f32.mrb[18].mxu1 }
 0x365   :  { %v1139_v7 = vmax.f32 %v1133_v58, 0.0  ;;  %v1137_v8 = vpop.f32.mrb[19].mxu1 }
 0x366   :  { %v1140_v9 = vmax.f32 %v1135_v5, 0.0 }
 0x367   :  { %v1141_v11 = vpack.c.bf16 %v1139_v7, %v1139_v7 }
 0x368   :  { %v1142_v10 = vpack.c.bf16 %v1140_v9, %v1140_v9 }
 0x36a   :  { %1310 = vmatprep.mubr.bf16.mxu1 %v1142_v10 }
 0x36b   :  { %1311 = vmatmul.mubr.bf16.vlgmr.msra.gmra.mrb[20].mxu1 %v1141_v11 }
 0x43e   :  { %v1486_v12 = vpop.f32.mrb[20].mxu1 }
 0x43f   :  { %v1487_v29 = vpop.f32.mrb[21].mxu1 }
 0x440   :  { %v1488_v14 = vadd.f32 %v1487_v29, %v1486_v12  ;;  %v1489_v31 = vpop.f32.mrb[22].mxu1 }
 0x441   :  { %v1490_v15 = vpop.f32.mrb[23].mxu1 }
 0x442   :  { %v1313_v16 = vadd.f32 %v1488_v14, %v1453_v13 }
 0x444   :  { %1689 = vtanh.f32 %v1313_v16 }
 0x44e   :  { %v1690_v17 = vpop.eup %1689 }
 0x44f   :  { %v1319_v18 = vpack.c.bf16 %v1690_v17, %v1690_v17 }
 0x451   :  { %1320 = vst [vmem:[#allocation14] sm:$0xf] %v1319_v18 }
 0x452   :  { %1856 = shalt.err (!%p1853_p4)
}
 0x453   :  { %s1857_s30 = scalar_lea.hbm %s2109_s11, 64 }
 0x454   :  { %p1858_p5 = scmp.ne.s32.totalorder %s2109_s11, %s1857_s30  ;;  %p1861_p6 = scmp.lt.u32.totalorder %s1857_s30, %s2109_s11 }
 0x456   :  { %p1863_p7 = pnand %p1861_p6, %p1858_p5 }
 0x458   :  { %1866 = shalt.err (!%p1863_p7)
}
 0x459   :  { %1330 = dma.vmem_to_hbm [thread:$0]  %s1328_s23, 64, %s2109_s11, [#allocation4]  }
 0x45a   :  { %1875 = dma.done.wait [#allocation4], 64  }
 0x45b   :  { %1876 = vsyncadd [#allocation4], 4294967232 }
 0x45c   :  { %1334 = vsyncpa [#allocation3], 1 }
 0x45d   :  { %1335 = vsyncpa [#allocation6], 1 }
 0x45e   :  { %1336 = vsyncpa [#allocation9], 1 }
 0x45f   :  { %1337 = vsyncpa [#allocation12], 1 }
 0x460   :  { %1338 = vsyncpa [#allocation4], 1 }

</bundles_post_ra>
